<compile_context>
chip_gen: v7x
topology: tpu7x:2x2x1
jax: 0.10.0
libtpu: 0.0.40
codegen_flags: <defaults>
</compile_context>

<pallas_src>
import jax
import jax.numpy as jnp
from jax import lax
from jax.experimental import pallas as pl
from jax.experimental.pallas import tpu as pltpu


def linear_sigmoid_kernel(x_ref, w_ref, b_ref, o_ref):
    # x_ref : (M_pad, D_pad)   padded input rows            (16, 128)
    # w_ref : (D_pad, D_pad)   padded PyTorch weight (out x in), NOT transposed
    # b_ref : (1, D_pad)       padded bias row
    # o_ref : (M_pad, D_pad)   padded output
    #
    # nn.Linear computes x @ W^T; express that as a dot_general contracting
    # dim 1 of x with dim 1 of W (trans_b semantics) so no transpose is needed
    # anywhere.
    y = lax.dot_general(
        x_ref[...], w_ref[...],
        dimension_numbers=(((1,), (1,)), ((), ())),
        preferred_element_type=jnp.float32,
    )
    y = y + b_ref[...]                      # broadcast bias over rows
    # sigmoid(y) = 1 / (1 + exp(-y)); exp and the approximate reciprocal both
    # issue on the (otherwise idle) EUP slot.
    o_ref[...] = pl.reciprocal(1.0 + jnp.exp(-y), approx=True).astype(o_ref.dtype)


def linear_sigmoid(x, w, b):
    """x: (B, S, D) float32; w: (D_out, D_in) (PyTorch layout); b: (D_out,).

    If this op is invoked many times per step, stack all the row-blocks into a
    single (N * M_pad, D_pad) input and make ONE pallas_call instead of many —
    per-call overhead dwarfs the ~2*10*10*10 FLOP of compute here.
    """
    B, S, D = x.shape
    M = B * S
    # Pad rows (sublanes) to a multiple of 8 and columns (lanes) to a multiple
    # of 128 so the kernel works on full, unmasked f32 vregs.
    M_pad = ((M + 7) // 8) * 8            # 10 -> 16
    D_pad = ((D + 127) // 128) * 128      # 10 -> 128

    x2 = jnp.zeros((M_pad, D_pad), x.dtype).at[:M, :D].set(x.reshape(M, D))
    w_pad = jnp.zeros((D_pad, D_pad), w.dtype).at[:D, :D].set(w)
    b_pad = jnp.zeros((1, D_pad), b.dtype).at[0, :D].set(b)

    out_pad = pl.pallas_call(
        linear_sigmoid_kernel,
        out_shape=jax.ShapeDtypeStruct((M_pad, D_pad), x.dtype),
        # Grid-less call: full arrays live in VMEM, no pipeline bookkeeping.
        in_specs=[
            pl.BlockSpec(memory_space=pltpu.MemorySpace.VMEM),
            pl.BlockSpec(memory_space=pltpu.MemorySpace.VMEM),
            pl.BlockSpec(memory_space=pltpu.MemorySpace.VMEM),
        ],
        out_specs=pl.BlockSpec(memory_space=pltpu.MemorySpace.VMEM),
    )(x2, w_pad, b_pad)

    return out_pad[:M, :D].reshape(B, S, D)


if __name__ == "__main__":
    key = jax.random.PRNGKey(0)
    kx, kw, kb = jax.random.split(key, 3)

    B, S, D = 1, 10, 10
    # Deterministic example input (PyTorch reference uses zeros(1,10,10);
    # we use random values to exercise the math).
    x = jax.random.normal(kx, (B, S, D), dtype=jnp.float32)

    # Deterministic Linear(10, 10) parameters (uniform like PyTorch's default).
    bound = 1.0 / jnp.sqrt(jnp.float32(D))
    w = jax.random.uniform(kw, (D, D), minval=-bound, maxval=bound,
                           dtype=jnp.float32)
    b = jax.random.uniform(kb, (D,), minval=-bound, maxval=bound,
                           dtype=jnp.float32)

    out = linear_sigmoid(x, w, b)
    out = jax.block_until_ready(out)

    # Sanity check against plain-JAX reference.  Tolerance is set for the
    # EUP approximate-reciprocal path (>= bf16-level accuracy); outputs are in
    # (0, 1) so a 5e-3 absolute bound is a tight semantic check.
    ref = jax.nn.sigmoid(jnp.einsum("bsd,od->bso", x, w) + b)
    assert out.shape == (B, S, D)
    assert jnp.allclose(out, ref, atol=5e-3, rtol=0), (
        float(jnp.max(jnp.abs(out - ref))))

    print("KERNEL_OK")
</pallas_src>

<mosaic_0001>
module attributes {stable_mosaic.version = 11 : i64} {
  func.func @linear_sigmoid_kernel(%arg0: memref<16x128xf32, #tpu.memory_space<vmem>>, %arg1: memref<128x128xf32, #tpu.memory_space<vmem>>, %arg2: memref<1x128xf32, #tpu.memory_space<vmem>>, %arg3: memref<16x128xf32, #tpu.memory_space<vmem>>) attributes {dimension_semantics = [], scalar_prefetch = 0 : i64, scratch_operands = 0 : i64, tpu.core_type = #tpu.core_type<tc>} {
    %c0 = arith.constant 0 : index
    %c0_0 = arith.constant 0 : index
    %0 = vector.load %arg0[%c0, %c0_0] : memref<16x128xf32, #tpu.memory_space<vmem>>, vector<16x128xf32>
    %c0_1 = arith.constant 0 : index
    %c0_2 = arith.constant 0 : index
    %1 = vector.load %arg1[%c0_1, %c0_2] : memref<128x128xf32, #tpu.memory_space<vmem>>, vector<128x128xf32>
    %cst = arith.constant dense<0.000000e+00> : vector<16x128xf32>
    %2 = tpu.matmul %0, %1, %cst {dimension_numbers = #tpu.dot_dimension_numbers<[1], [1], [0], [0], [0, 0, 1, 0], [], []>} : vector<16x128xf32>, vector<128x128xf32>, vector<16x128xf32> -> vector<16x128xf32>
    %c0_3 = arith.constant 0 : index
    %c0_4 = arith.constant 0 : index
    %3 = vector.load %arg2[%c0_3, %c0_4] : memref<1x128xf32, #tpu.memory_space<vmem>>, vector<1x128xf32>
    %4 = vector.broadcast %3 : vector<1x128xf32> to vector<16x128xf32>
    %5 = arith.addf %2, %4 : vector<16x128xf32>
    %cst_5 = arith.constant 0.000000e+00 : f32
    %6 = vector.broadcast %cst_5 : f32 to vector<16x128xf32>
    %7 = arith.subf %6, %5 : vector<16x128xf32>
    %8 = math.exp %7 : vector<16x128xf32>
    %cst_6 = arith.constant 1.000000e+00 : f32
    %9 = vector.broadcast %cst_6 : f32 to vector<16x128xf32>
    %10 = arith.addf %9, %8 : vector<16x128xf32>
    %11 = tpu.reciprocal %10 {approx = true} : vector<16x128xf32> -> vector<16x128xf32>
    %c0_7 = arith.constant 0 : index
    %c0_8 = arith.constant 0 : index
    %12 = vector.load %arg3[%c0_7, %c0_8] : memref<16x128xf32, #tpu.memory_space<vmem>>, vector<16x128xf32>
    tpu.vector_store %arg3[%c0_7, %c0_8], %11 {strides = array<i32>} : memref<16x128xf32, #tpu.memory_space<vmem>>, vector<16x128xf32>,
    return
  }
}

</mosaic_0001>

<bundles_post_ra>
// kernel: tpu_custom_call.1
= control target key start
LH: loop header
LB: loop body
LE: loop exit
PB: predicated region body
PF: predicated region fallthrough
CT: control target
= control target key end

     0   :  { %8 = vsyncpa [#allocation3], 0  ;;  %s417_s0 = inlined_call_operand.hbm [shape: f32[16,128], index: 0, kind: input, shape index: {}]   ;;  %s418_s1 = inlined_call_operand.hbm [shape: f32[128,128], index: 1, kind: input, shape index: {}]   ;;  %s419_s2 = inlined_call_operand.vmem [shape: f32[1,128], index: 2, kind: input, shape index: {}]   ;;  %s420_s3 = inlined_call_operand.hbm [shape: f32[16,128], index: 3, kind: output, shape index: {}]  }
   0x1   :  { %9 = vsyncpa [#allocation6], 0 }
   0x2   :  { %10 = vsyncpa [#allocation4], 0  ;;  %s344_s12 = smov [#allocation2]   ;;  %s272_s16 = scalar_lea.hbm %s417_s0, 256 }
   0x3   :  { %s16_s13 = sshll.u32 %s344_s12, 4  ;;  %p273_p0 = scmp.ne.s32.totalorder %s417_s0, %s272_s16  ;;  %s17_s13 = int_to_ptr.vmem [resolvable:$true] %s16_s13 }
   0x4   :  { %p276_p1 = scmp.lt.u32.totalorder %s272_s16, %s417_s0 }
   0x6   :  { %p278_p2 = pnand %p276_p1, %p273_p0 }
   0x8   :  { %281 = shalt.err (!%p278_p2)
}
   0x9   :  { %s282_s21 = scalar_lea.vmem %s17_s13, 256  ;;  %p287_p4 = scmp.lt.s32.totalorder %s17_s13, %s17_s13 }
   0xa   :  { %p283_p3 = scmp.ne.s32.totalorder %s17_s13, %s282_s21  ;;  %p288_p5 = scmp.lt.s32.totalorder %s282_s21, %s282_s21 }
   0xc   :  { %p289_p6 = por %p288_p5, %p287_p4 }
   0xe   :  { %p290_p7 = pnand %p289_p6, %p283_p3 }
  0x10   :  { %293 = shalt.err (!%p290_p7)
}
  0x11   :  { %s345_s22 = smov 128   ;;  %s346_s23 = smov 8  }
  0x12   :  { %22 = dma.hbm_to_vmem [thread:$0]  %s417_s0, 256, %s17_s13, [#allocation3], %s345_s22, %s345_s22, %s346_s23  }
  0x13   :  { %s347_s26 = smov [#allocation5]   ;;  %s294_s30 = scalar_lea.hbm %s418_s1, 2048 }
  0x14   :  { %s28_s27 = sshll.u32 %s347_s26, 4  ;;  %p295_p8 = scmp.ne.s32.totalorder %s418_s1, %s294_s30  ;;  %s29_s27 = int_to_ptr.vmem [resolvable:$true] %s28_s27 }
  0x15   :  { %p298_p9 = scmp.lt.u32.totalorder %s294_s30, %s418_s1 }
  0x17   :  { %p300_p10 = pnand %p298_p9, %p295_p8 }
  0x19   :  { %303 = shalt.err (!%p300_p10)
}
  0x1a   :  { %s304_s8 = scalar_lea.vmem %s29_s27, 2048  ;;  %p309_p12 = scmp.lt.s32.totalorder %s29_s27, %s29_s27 }
  0x1b   :  { %p305_p11 = scmp.ne.s32.totalorder %s29_s27, %s304_s8  ;;  %p310_p13 = scmp.lt.s32.totalorder %s304_s8, %s304_s8 }
  0x1d   :  { %p311_p0 = por %p310_p13, %p309_p12 }
  0x1f   :  { %p312_p1 = pnand %p311_p0, %p305_p11 }
  0x21   :  { %315 = shalt.err (!%p312_p1)
}
  0x22   :  { %34 = dma.hbm_to_vmem [thread:$0]  %s418_s1, 2048, %s29_s27, [#allocation6], %s345_s22, %s345_s22, %s346_s23  }
  0x23   :  { %338 = dma.done.wait [#allocation3], 256  }
  0x24   :  { %339 = vsyncadd [#allocation3], 4294967040 }
  0x25   :  { %340 = dma.done.wait [#allocation6], 2048  }
  0x26   :  { %341 = vsyncadd [#allocation6], 4294965248  ;;  %v45_v0 = vld [vmem:[#allocation5] sm:$0xff]  ;;  %v46_v1 = vld [vmem:[#allocation5 + $0x8] sm:$0xff]  ;;  %s348_s11 = smov [#allocation7]  }
  0x27   :  { %v47_v2 = vld [vmem:[#allocation5 + $0x10] sm:$0xff]  ;;  %v227_v3 = vpack.c.bf16 %v46_v1, %v45_v0  ;;  %v48_v4 = vld [vmem:[#allocation5 + $0x18] sm:$0xff]  ;;  %v49_v7 = vld [vmem:[#allocation5 + $0x20] sm:$0xff]  ;;  %s160_s12 = sshll.u32 %s348_s11, 4  ;;  %s161_s12 = int_to_ptr.vmem [resolvable:$true] %s160_s12 }
  0x28   :  { %v231_v5 = vpack.c.bf16 %v48_v4, %v47_v2  ;;  %v43_v6 = vld [vmem:[#allocation2] sm:$0xff]  ;;  %v50_v8 = vld [vmem:[#allocation5 + $0x28] sm:$0xff]  ;;  %v52_v11 = vld [vmem:[#allocation5 + $0x38] sm:$0xff]  ;;  %p321_p3 = scmp.lt.s32.totalorder %s161_s12, %s161_s12 }
  0x29   :  { %228 = vmatprep.subr.bf16.mxu0 %v227_v3  ;;  %224 = vmatprep.mubr.f32.mxu0 %v43_v6  ;;  %v235_v9 = vpack.c.bf16 %v50_v8, %v49_v7  ;;  %v51_v10 = vld [vmem:[#allocation5 + $0x30] sm:$0xff]  ;;  %v53_v13 = vld [vmem:[#allocation5 + $0x40] sm:$0xff]  ;;  %v54_v14 = vld [vmem:[#allocation5 + $0x48] sm:$0xff] }
  0x2a   :  { %230 = vmatpush3.bf16.xpose.msra.mxu0 %v227_v3  ;;  %v239_v12 = vpack.c.bf16 %v52_v11, %v51_v10  ;;  %v243_v15 = vpack.c.bf16 %v54_v14, %v53_v13  ;;  %v55_v16 = vld [vmem:[#allocation5 + $0x50] sm:$0xff]  ;;  %v56_v17 = vld [vmem:[#allocation5 + $0x58] sm:$0xff]  ;;  %v57_v19 = vld [vmem:[#allocation5 + $0x60] sm:$0xff] }
  0x2b   :  { %232 = vmatprep.subr.bf16.mxu0 %v231_v5  ;;  %v247_v18 = vpack.c.bf16 %v56_v17, %v55_v16  ;;  %v58_v20 = vld [vmem:[#allocation5 + $0x68] sm:$0xff]  ;;  %v59_v22 = vld [vmem:[#allocation5 + $0x70] sm:$0xff]  ;;  %v60_v23 = vld [vmem:[#allocation5 + $0x78] sm:$0xff] }
  0x2c   :  { %v251_v21 = vpack.c.bf16 %v58_v20, %v57_v19  ;;  %v255_v24 = vpack.c.bf16 %v60_v23, %v59_v22  ;;  %v44_v25 = vld [vmem:[#allocation2 + $0x8] sm:$0xff]  ;;  %v173_v26 = vld [vmem:[%s419_s2] ss:$0 sm:$0xff]  ;;  %s316_s2 = scalar_lea.vmem %s161_s12, 256 }
  0x2d   :  { %p317_p2 = scmp.ne.s32.totalorder %s161_s12, %s316_s2  ;;  %p322_p4 = scmp.lt.s32.totalorder %s316_s2, %s316_s2 }
  0x2f   :  { %p323_p5 = por %p322_p4, %p321_p3 }
  0x31   :  { %p324_p6 = pnand %p323_p5, %p317_p2 }
  0x32   :  { %234 = vmatpush3.bf16.xpose.msra.mxu0 %v231_v5 }
  0x33   :  { %236 = vmatprep.subr.bf16.mxu0 %v235_v9 }
  0x3a   :  { %238 = vmatpush3.bf16.xpose.msra.mxu0 %v235_v9 }
  0x3b   :  { %240 = vmatprep.subr.bf16.mxu0 %v239_v12 }
  0x42   :  { %242 = vmatpush3.bf16.xpose.msra.mxu0 %v239_v12 }
  0x43   :  { %244 = vmatprep.subr.bf16.mxu0 %v243_v15 }
  0x4a   :  { %246 = vmatpush3.bf16.xpose.msra.mxu0 %v243_v15 }
  0x4b   :  { %248 = vmatprep.subr.bf16.mxu0 %v247_v18 }
  0x52   :  { %250 = vmatpush3.bf16.xpose.msra.mxu0 %v247_v18 }
  0x53   :  { %252 = vmatprep.subr.bf16.mxu0 %v251_v21 }
  0x5a   :  { %254 = vmatpush3.bf16.xpose.msra.mxu0 %v251_v21 }
  0x5b   :  { %256 = vmatprep.subr.bf16.mxu0 %v255_v24 }
  0x62   :  { %258 = vmatpush3.bf16.xpose.msra.mxu0 %v255_v24 }
  0x69   :  { %225 = vmatmul.mubr.f32.vlgmr.msra.gmra.mrb[0].mxu0 %v44_v25 }
 0x13c   :  { %v226_v27 = vpop.f32.mrb[0].mxu0 }
 0x13d   :  { %v140_v28 = vadd.f32 %v226_v27, %v173_v26  ;;  %v134_v29 = vpop.f32.mrb[1].mxu0 }
 0x13e   :  { %v135_v30 = vadd.f32 %v173_v26, %v134_v29 }
 0x13f   :  { %v144_v31 = vsub.f32 0.0, %v140_v28 }
 0x140   :  { %v143_v32 = vsub.f32 0.0, %v135_v30 }
 0x141   :  { %v147_v33 = vmul.f32 1.442695, %v144_v31 }
 0x142   :  { %v145_v34 = vmul.f32 1.442695, %v143_v32 }
 0x143   :  { %264 = vpow2.f32 %v147_v33 }
 0x144   :  { %266 = vpow2.f32 %v145_v34 }
 0x14d   :  { %v265_v35 = vpop.eup %264 }
 0x14e   :  { %v267_v36 = vpop.eup %266  ;;  %v150_v37 = vadd.f32 1.0, %v265_v35 }
 0x14f   :  { %v149_v38 = vadd.f32 1.0, %v267_v36 }
 0x150   :  { %268 = vrcp.f32 %v150_v37 }
 0x151   :  { %270 = vrcp.f32 %v149_v38 }
 0x15a   :  { %v269_v39 = vpop.eup %268 }
 0x15b   :  { %v271_v40 = vpop.eup %270  ;;  %154 = vst [vmem:[#allocation7 + $0x8] sm:$0xff] %v269_v39 }
 0x15c   :  { %153 = vst [vmem:[#allocation7] sm:$0xff] %v271_v40 }
 0x15d   :  { %327 = shalt.err (!%p324_p6)
}
 0x15e   :  { %s328_s15 = scalar_lea.hbm %s420_s3, 256 }
 0x15f   :  { %p329_p7 = scmp.ne.s32.totalorder %s420_s3, %s328_s15  ;;  %p332_p8 = scmp.lt.u32.totalorder %s328_s15, %s420_s3 }
 0x161   :  { %p334_p9 = pnand %p332_p8, %p329_p7 }
 0x163   :  { %337 = shalt.err (!%p334_p9)
}
 0x164   :  { %166 = dma.vmem_to_hbm [thread:$0]  %s161_s12, 256, %s420_s3, [#allocation4], %s345_s22, %s345_s22, %s346_s23  }
 0x165   :  { %342 = dma.done.wait [#allocation4], 256  }
 0x166   :  { %343 = vsyncadd [#allocation4], 4294967040 }
 0x167   :  { %170 = vsyncpa [#allocation3], 1 }
 0x168   :  { %171 = vsyncpa [#allocation6], 1 }
 0x169   :  { %172 = vsyncpa [#allocation4], 1 }

</bundles_post_ra>
